<compile_context>
chip_gen: v5e
topology: v5e:2x2
jax: 0.10.0
libtpu: 0.0.40
codegen_flags: <defaults>
</compile_context>

<pallas_src>
import jax
import jax.numpy as jnp
from jax.experimental import pallas as pl
from jax.experimental.pallas import tpu as pltpu


# ----------------------------------------------------------------------------
# Kernel
# ----------------------------------------------------------------------------
def vnet_kernel(x_ref, w0_ref, b0_ref, w1_ref, b1_ref, w2_ref, b2_ref, o_ref):
    # x_ref: [TILE_B, state_dim] f32.  Cast to bf16 in-kernel (no extra HBM
    # pass); all matmuls accumulate in f32 on the MXU.
    xb = x_ref[...].astype(jnp.bfloat16)

    # fc0 + relu, feature-major: w0[64, sd] contracted with x[TILE_B, sd] over
    # the state_dim axis -> h0 [64, TILE_B] (lane-dense activations).
    h0 = jax.lax.dot_general(
        w0_ref[...], xb,
        dimension_numbers=(((1,), (1,)), ((), ())),
        preferred_element_type=jnp.float32)
    h0 = jnp.maximum(h0 + b0_ref[...], 0.0)          # b0: [64, 1] column

    # fc1 + relu: w1[32, 64] @ h0[64, TILE_B] -> [32, TILE_B]
    h1 = jnp.dot(w1_ref[...], h0.astype(jnp.bfloat16),
                 preferred_element_type=jnp.float32)
    h1 = jnp.maximum(h1 + b1_ref[...], 0.0)          # b1: [32, 1] column

    # fc2 + relu: w2[1, 32] @ h1[32, TILE_B] -> [1, TILE_B] (lane-dense output)
    v = jnp.dot(w2_ref[...], h1.astype(jnp.bfloat16),
                preferred_element_type=jnp.float32)
    # ReLU on the final layer is intentional: the reference module applies it.
    v = jnp.maximum(v + b2_ref[...], 0.0)            # b2: [1, 1]
    o_ref[...] = v.astype(o_ref.dtype)


# ----------------------------------------------------------------------------
# Tiling / VMEM helpers
# ----------------------------------------------------------------------------
def _round_up(v, m):
    return ((v + m - 1) // m) * m


def _device_kind():
    try:
        return jax.devices()[0].device_kind.lower()
    except Exception:
        return ""


def _pick_tile_b(B, tile_b):
    # Batch sits on the lane axis of the output -> tile must be a multiple of
    # 128 (round a user-supplied tile down, never below 128).
    tile_b = max(128, (int(tile_b) // 128) * 128)

    kind = _device_kind()
    # Generation-aware cap: v5e has a 16 MiB scoped-VMEM default and lower HBM
    # BW; v6e/v7x (and unknown chips) take the larger tile.
    cap = 4096 if "v5" in kind else 8192
    tile_b = min(tile_b, cap)

    # Never larger than the (lane-padded) batch.
    b_pad = _round_up(B, 128)
    tile_b = min(tile_b, b_pad)

    # v7x has 2 TensorCores per chip: keep >= 2 grid steps when the batch
    # allows it so the "parallel" axis gives both cores work.
    if "v7" in kind and b_pad > 128 and b_pad <= tile_b:
        tile_b = max(128, _round_up(pl.cdiv(b_pad, 2), 128))
    return tile_b


def _vmem_limit_bytes(tile_b, state_dim):
    # Per-tile footprint estimate (double-buffered pipeline buffers + compute
    # temporaries), with headroom.  The narrow x block pads its last dim to
    # 128 lanes, which dominates the budget.
    sd_pad = max(128, _round_up(state_dim, 128))
    est = 0
    est += 2 * tile_b * sd_pad * 4            # double-buffered f32 x tile
    est += 2 * 8 * tile_b * 4                 # double-buffered [1, tile_b] out
    est += tile_b * (64 + 32) * 4             # f32 h0 / h1 temporaries
    est += tile_b * (sd_pad + 64 + 32) * 2    # bf16 casts of x / h0 / h1
    est += 2 << 20                            # weights, biases, slack
    # Generous but bounded: stays well under v7x's 64 MiB physical VMEM and
    # raises v5e's 16 MiB scoped default when needed.
    return int(min(max(32 << 20, 2 * est), 56 << 20))


# ----------------------------------------------------------------------------
# Wrapper
# ----------------------------------------------------------------------------
def vnet_forward(x, params, tile_b=8192, allow_xla_small_batch=False):
    """x: [B, state_dim] float32 -> [B, 1] float32."""
    B, state_dim = x.shape

    # For tiny batches the whole call is pallas_call launch cost; let XLA fuse
    # the three tiny GEMMs instead (opt-in so the demo exercises the kernel).
    if allow_xla_small_batch and B < 1024:
        return vnet_reference(x, params)

    tile_b = _pick_tile_b(B, tile_b)
    num_tiles = pl.cdiv(B, tile_b)
    b_pad = num_tiles * tile_b
    if b_pad != B:
        # Padded rows compute relu(bias) garbage; harmless — sliced off below.
        x = jnp.pad(x, ((0, b_pad - B), (0, 0)))

    # Weights are tiny; cast once to bf16 for the MXU.  Biases stay f32 and
    # are stored as [feat, 1] columns (sublane broadcast in the kernel).
    w0 = params["w0"].astype(jnp.bfloat16)   # [64, state_dim]  (PyTorch layout)
    w1 = params["w1"].astype(jnp.bfloat16)   # [32, 64]
    w2 = params["w2"].astype(jnp.bfloat16)   # [1, 32]
    b0, b1, b2 = params["b0"], params["b1"], params["b2"]

    def resident(a):
        # Constant index_map: fetched once, stays resident in VMEM for all
        # grid steps (no per-step re-fetch).
        return pl.BlockSpec(a.shape, lambda i: (0, 0))

    out = pl.pallas_call(
        vnet_kernel,
        out_shape=jax.ShapeDtypeStruct((1, b_pad), jnp.float32),
        grid=(num_tiles,),
        in_specs=[
            pl.BlockSpec((tile_b, state_dim), lambda i: (i, 0)),  # x: batch-tiled
            resident(w0), resident(b0),
            resident(w1), resident(b1),
            resident(w2), resident(b2),
        ],
        # Lane-dense output: each grid step writes a contiguous [1, tile_b]
        # slab of row 0 (unmasked 128-lane stores instead of [B, 1] vst.msk).
        out_specs=pl.BlockSpec((1, tile_b), lambda i: (0, i)),
        compiler_params=pltpu.CompilerParams(
            dimension_semantics=("parallel",),
            vmem_limit_bytes=_vmem_limit_bytes(tile_b, state_dim)),
    )(x, w0, b0, w1, b1, w2, b2)

    return out[0, :B].reshape(B, 1)


# ----------------------------------------------------------------------------
# Params / reference
# ----------------------------------------------------------------------------
def init_params(key, state_dim):
    """Deterministic init mimicking PyTorch Linear (uniform +-1/sqrt(fan_in)).

    Weights keep the PyTorch [out, in] layout (exactly what the feature-major
    kernel consumes); biases are stored as [out, 1] columns.
    """
    ks = jax.random.split(key, 6)

    def linear(kw, kb, fan_in, fan_out):
        bound = 1.0 / jnp.sqrt(fan_in)
        w = jax.random.uniform(kw, (fan_out, fan_in), jnp.float32, -bound, bound)
        b = jax.random.uniform(kb, (fan_out, 1), jnp.float32, -bound, bound)
        return w, b

    w0, b0 = linear(ks[0], ks[1], state_dim, 64)
    w1, b1 = linear(ks[2], ks[3], 64, 32)
    w2, b2 = linear(ks[4], ks[5], 32, 1)
    return {"w0": w0, "b0": b0, "w1": w1, "b1": b1, "w2": w2, "b2": b2}


def vnet_reference(x, p):
    h = jnp.maximum(x @ p["w0"].T + p["b0"].T, 0.0)
    h = jnp.maximum(h @ p["w1"].T + p["b1"].T, 0.0)
    h = jnp.maximum(h @ p["w2"].T + p["b2"].T, 0.0)
    return h


# ----------------------------------------------------------------------------
# Demo / correctness check
# ----------------------------------------------------------------------------
if __name__ == "__main__":
    key = jax.random.PRNGKey(0)
    k_params, k_x1, k_x2 = jax.random.split(key, 3)

    state_dim = 16
    params = init_params(k_params, state_dim)

    # Small batch (module-typical shape) through the Pallas path.
    x_small = jax.random.normal(k_x1, (8, state_dim), jnp.float32)
    out_small = jax.block_until_ready(vnet_forward(x_small, params))
    ref_small = vnet_reference(x_small, params)
    assert out_small.shape == (8, 1)
    # bf16 MXU operands (f32 accumulation) -> loosened tolerance vs pure f32.
    assert jnp.allclose(out_small, ref_small, atol=2e-2, rtol=2e-2), (
        float(jnp.max(jnp.abs(out_small - ref_small))))

    # Multi-tile path: non-128-multiple batch + explicit small tile to force
    # several pipelined grid steps and exercise padding / slicing.
    x_big = jax.random.normal(k_x2, (549, state_dim), jnp.float32)
    out_big = jax.block_until_ready(vnet_forward(x_big, params, tile_b=256))
    ref_big = vnet_reference(x_big, params)
    assert out_big.shape == (549, 1)
    assert jnp.allclose(out_big, ref_big, atol=2e-2, rtol=2e-2), (
        float(jnp.max(jnp.abs(out_big - ref_big))))

    print("KERNEL_OK")
</pallas_src>

<mosaic_0001>
module attributes {stable_mosaic.version = 11 : i64} {
  func.func @vnet_kernel(%arg0: i32, %arg1: memref<128x16xf32, #tpu.memory_space<vmem>>, %arg2: memref<64x16xbf16, #tpu.memory_space<vmem>>, %arg3: memref<64x1xf32, #tpu.memory_space<vmem>>, %arg4: memref<32x64xbf16, #tpu.memory_space<vmem>>, %arg5: memref<32x1xf32, #tpu.memory_space<vmem>>, %arg6: memref<1x32xbf16, #tpu.memory_space<vmem>>, %arg7: memref<1x1xf32, #tpu.memory_space<vmem>>, %arg8: memref<1x128xf32, #tpu.memory_space<vmem>>) attributes {dimension_semantics = [#tpu.dimension_semantics<parallel>], iteration_bounds = array<i64: 1>, scalar_prefetch = 0 : i64, scratch_operands = 0 : i64, tpu.core_type = #tpu.core_type<tc>, window_params = [{transform_indices = @transform_0, window_bounds = array<i64: 128, 16>}, {pipeline_mode = #tpu.pipeline_mode<synchronous>, transform_indices = @transform_1, window_bounds = array<i64: 64, 16>}, {pipeline_mode = #tpu.pipeline_mode<synchronous>, transform_indices = @transform_2, window_bounds = array<i64: 64, 1>}, {pipeline_mode = #tpu.pipeline_mode<synchronous>, transform_indices = @transform_3, window_bounds = array<i64: 32, 64>}, {pipeline_mode = #tpu.pipeline_mode<synchronous>, transform_indices = @transform_4, window_bounds = array<i64: 32, 1>}, {pipeline_mode = #tpu.pipeline_mode<synchronous>, transform_indices = @transform_5, window_bounds = array<i64: 1, 32>}, {pipeline_mode = #tpu.pipeline_mode<synchronous>, transform_indices = @transform_6, window_bounds = array<i64: 1, 1>}, {transform_indices = @transform_7, window_bounds = array<i64: 1, 128>}]} {
    %c0 = arith.constant 0 : index
    %c0_0 = arith.constant 0 : index
    %0 = vector.load %arg1[%c0, %c0_0] : memref<128x16xf32, #tpu.memory_space<vmem>>, vector<128x16xf32>
    %1 = arith.truncf %0 : vector<128x16xf32> to vector<128x16xbf16>
    %c0_1 = arith.constant 0 : index
    %c0_2 = arith.constant 0 : index
    %2 = vector.load %arg2[%c0_1, %c0_2] : memref<64x16xbf16, #tpu.memory_space<vmem>>, vector<64x16xbf16>
    %cst = arith.constant dense<0.000000e+00> : vector<64x128xf32>
    %3 = tpu.matmul %2, %1, %cst {dimension_numbers = #tpu.dot_dimension_numbers<[1], [1], [0], [0], [0, 0, 1, 0], [], []>} : vector<64x16xbf16>, vector<128x16xbf16>, vector<64x128xf32> -> vector<64x128xf32>
    %c0_3 = arith.constant 0 : index
    %c0_4 = arith.constant 0 : index
    %4 = vector.load %arg3[%c0_3, %c0_4] : memref<64x1xf32, #tpu.memory_space<vmem>>, vector<64x1xf32>
    %5 = vector.broadcast %4 : vector<64x1xf32> to vector<64x128xf32>
    %6 = arith.addf %3, %5 : vector<64x128xf32>
    %cst_5 = arith.constant 0.000000e+00 : f32
    %7 = vector.broadcast %cst_5 : f32 to vector<64x128xf32>
    %8 = arith.maximumf %6, %7 : vector<64x128xf32>
    %c0_6 = arith.constant 0 : index
    %c0_7 = arith.constant 0 : index
    %9 = vector.load %arg4[%c0_6, %c0_7] : memref<32x64xbf16, #tpu.memory_space<vmem>>, vector<32x64xbf16>
    %10 = arith.truncf %8 : vector<64x128xf32> to vector<64x128xbf16>
    %cst_8 = arith.constant dense<0.000000e+00> : vector<32x128xf32>
    %11 = tpu.matmul %9, %10, %cst_8 {dimension_numbers = #tpu.dot_dimension_numbers<[1], [0], [0], [1], [0, 0, 1, 1], [], []>} : vector<32x64xbf16>, vector<64x128xbf16>, vector<32x128xf32> -> vector<32x128xf32>
    %c0_9 = arith.constant 0 : index
    %c0_10 = arith.constant 0 : index
    %12 = vector.load %arg5[%c0_9, %c0_10] : memref<32x1xf32, #tpu.memory_space<vmem>>, vector<32x1xf32>
    %13 = vector.broadcast %12 : vector<32x1xf32> to vector<32x128xf32>
    %14 = arith.addf %11, %13 : vector<32x128xf32>
    %cst_11 = arith.constant 0.000000e+00 : f32
    %15 = vector.broadcast %cst_11 : f32 to vector<32x128xf32>
    %16 = arith.maximumf %14, %15 : vector<32x128xf32>
    %c0_12 = arith.constant 0 : index
    %c0_13 = arith.constant 0 : index
    %17 = vector.load %arg6[%c0_12, %c0_13] : memref<1x32xbf16, #tpu.memory_space<vmem>>, vector<1x32xbf16>
    %18 = arith.truncf %16 : vector<32x128xf32> to vector<32x128xbf16>
    %cst_14 = arith.constant dense<0.000000e+00> : vector<1x128xf32>
    %19 = tpu.matmul %17, %18, %cst_14 {dimension_numbers = #tpu.dot_dimension_numbers<[1], [0], [0], [1], [0, 0, 1, 1], [], []>} : vector<1x32xbf16>, vector<32x128xbf16>, vector<1x128xf32> -> vector<1x128xf32>
    %c0_15 = arith.constant 0 : index
    %c0_16 = arith.constant 0 : index
    %20 = vector.load %arg7[%c0_15, %c0_16] : memref<1x1xf32, #tpu.memory_space<vmem>>, vector<1x1xf32>
    %21 = vector.broadcast %20 : vector<1x1xf32> to vector<1x128xf32>
    %22 = arith.addf %19, %21 : vector<1x128xf32>
    %cst_17 = arith.constant 0.000000e+00 : f32
    %23 = vector.broadcast %cst_17 : f32 to vector<1x128xf32>
    %24 = arith.maximumf %22, %23 : vector<1x128xf32>
    %c0_18 = arith.constant 0 : index
    %c0_19 = arith.constant 0 : index
    %25 = vector.load %arg8[%c0_18, %c0_19] : memref<1x128xf32, #tpu.memory_space<vmem>>, vector<1x128xf32>
    tpu.vector_store %arg8[%c0_18, %c0_19], %24 {strides = array<i32>} : memref<1x128xf32, #tpu.memory_space<vmem>>, vector<1x128xf32>,
    return
  }
  func.func @transform_0(%arg0: i32) -> (i32, i32) {
    %c0_i32 = arith.constant 0 : i32
    %c0_i32_0 = arith.constant 0 : i32
    return %arg0, %c0_i32 : i32, i32
  }
  func.func @transform_1(%arg0: i32) -> (i32, i32) {
    %c0_i32 = arith.constant 0 : i32
    %c0_i32_0 = arith.constant 0 : i32
    %c0_i32_1 = arith.constant 0 : i32
    return %c0_i32, %c0_i32_0 : i32, i32
  }
  func.func @transform_2(%arg0: i32) -> (i32, i32) {
    %c0_i32 = arith.constant 0 : i32
    %c0_i32_0 = arith.constant 0 : i32
    %c0_i32_1 = arith.constant 0 : i32
    return %c0_i32, %c0_i32_0 : i32, i32
  }
  func.func @transform_3(%arg0: i32) -> (i32, i32) {
    %c0_i32 = arith.constant 0 : i32
    %c0_i32_0 = arith.constant 0 : i32
    %c0_i32_1 = arith.constant 0 : i32
    return %c0_i32, %c0_i32_0 : i32, i32
  }
  func.func @transform_4(%arg0: i32) -> (i32, i32) {
    %c0_i32 = arith.constant 0 : i32
    %c0_i32_0 = arith.constant 0 : i32
    %c0_i32_1 = arith.constant 0 : i32
    return %c0_i32, %c0_i32_0 : i32, i32
  }
  func.func @transform_5(%arg0: i32) -> (i32, i32) {
    %c0_i32 = arith.constant 0 : i32
    %c0_i32_0 = arith.constant 0 : i32
    %c0_i32_1 = arith.constant 0 : i32
    return %c0_i32, %c0_i32_0 : i32, i32
  }
  func.func @transform_6(%arg0: i32) -> (i32, i32) {
    %c0_i32 = arith.constant 0 : i32
    %c0_i32_0 = arith.constant 0 : i32
    %c0_i32_1 = arith.constant 0 : i32
    return %c0_i32, %c0_i32_0 : i32, i32
  }
  func.func @transform_7(%arg0: i32) -> (i32, i32) {
    %c0_i32 = arith.constant 0 : i32
    %c0_i32_0 = arith.constant 0 : i32
    return %c0_i32, %arg0 : i32, i32
  }
}

</mosaic_0001>

<bundles_post_ra>
// kernel: tpu_custom_call.1
= control target key start
LH: loop header
LB: loop body
LE: loop exit
PB: predicated region body
PF: predicated region fallthrough
CT: control target
= control target key end

     0   :  { %s562_s0 = inlined_call_operand.vmem [shape: f32[128,16], index: 0, kind: input, shape index: {}]   ;;  %s563_s1 = inlined_call_operand.vmem [shape: bf16[64,16], index: 1, kind: input, shape index: {}]   ;;  %s564_s2 = inlined_call_operand.vmem [shape: f32[64,1], index: 2, kind: input, shape index: {}]   ;;  %s565_s3 = inlined_call_operand.vmem [shape: bf16[32,64], index: 3, kind: input, shape index: {}]   ;;  %s566_s4 = inlined_call_operand.vmem [shape: f32[32,1], index: 4, kind: input, shape index: {}]   ;;  %s567_s5 = inlined_call_operand.vmem [shape: bf16[1,32], index: 5, kind: input, shape index: {}]   ;;  %s568_s6 = inlined_call_operand.<no memory space> [shape: f32[1,1], index: 6, kind: input, shape index: {}]   ;;  %s569_s7 = inlined_call_operand.hbm [shape: f32[1,128], index: 7, kind: output, shape index: {}]  }
   0x1   :  { %v12_v0 = vstv %s568_s6 }
   0x2   :  { %13 = vst [vmem:[#allocation2] sm:$0x1] %v12_v0 }
   0x3   :  { %v44_v1 = vld [vmem:[%s562_s0 + $0x70] sm:$0xff]  ;;  %v45_v2 = vld [vmem:[%s562_s0 + $0x78] sm:$0xff]  ;;  %vm130_vm0 = vcmask 130048   ;;  %v42_v4 = vld [vmem:[%s562_s0 + $0x60] sm:$0xff] }
   0x4   :  { %v53_v3 = vpack.c.bf16 %v45_v2, %v44_v1  ;;  %v43_v5 = vld [vmem:[%s562_s0 + $0x68] sm:$0xff] }
   0x6   :  { %v165_v6 = vsel %vm130_vm0, %v53_v3, 0 }
   0x7   :  { %14 = vsyncpa [#allocation4], 0  ;;  %358 = vmatpush.bf16.xpose.msra.mxu3 %v165_v6  ;;  %167 = vmatpush.bf16.xpose.msra.mxu0 %v165_v6  ;;  %v52_v7 = vpack.c.bf16 %v43_v5, %v42_v4  ;;  %v40_v9 = vld [vmem:[%s562_s0 + $0x50] sm:$0xff]  ;;  %v41_v10 = vld [vmem:[%s562_s0 + $0x58] sm:$0xff]  ;;  %v397_v24 = vmov 0   ;;  %vm246_vm1 = vcmask 523264  }
   0x8   :  { %v51_v11 = vpack.c.bf16 %v41_v10, %v40_v9  ;;  %v38_v13 = vld [vmem:[%s562_s0 + $0x40] sm:$0xff]  ;;  %v39_v14 = vld [vmem:[%s562_s0 + $0x48] sm:$0xff]  ;;  %v36_v17 = vld [vmem:[%s562_s0 + $0x30] sm:$0xff]  ;;  %368 = vset.pattern.permute.xlu0 %v397_v24  ;;  %369 = vset.pattern.permute.xlu1 %v397_v24  ;;  %vm286_vm2 = vcmask 261120   ;;  %s398_s18 = smov [#allocation3]   ;;  %s312_s22 = sshll.u32 %s569_s7, 4  ;;  %s313_s22 = int_to_ptr.hbm [resolvable:$true] %s312_s22 }
   0x9   :  { %v162_v8 = vsel %vm130_vm0, %v52_v7, 0  ;;  %v50_v15 = vpack.c.bf16 %v39_v14, %v38_v13  ;;  %v37_v18 = vld [vmem:[%s562_s0 + $0x38] sm:$0xff]  ;;  %v34_v21 = vld [vmem:[%s562_s0 + $0x20] sm:$0xff]  ;;  %v35_v22 = vld [vmem:[%s562_s0 + $0x28] sm:$0xff]  ;;  %370 = vset.pattern.permute.xlu2 %v397_v24  ;;  %s310_s19 = sshll.u32 %s398_s18, 4  ;;  %s311_s19 = int_to_ptr.vmem [resolvable:$true] %s310_s19 }
   0xa   :  { %v159_v12 = vsel %vm130_vm0, %v51_v11, 0  ;;  %v49_v19 = vpack.c.bf16 %v37_v18, %v36_v17  ;;  %v48_v23 = vpack.c.bf16 %v35_v22, %v34_v21  ;;  %v32_v26 = vld [vmem:[%s562_s0 + $0x10] sm:$0xff]  ;;  %v33_v27 = vld [vmem:[%s562_s0 + $0x18] sm:$0xff]  ;;  %v30_v30 = vld [vmem:[%s562_s0] sm:$0xff] }
   0xb   :  { %v156_v16 = vsel %vm130_vm0, %v50_v15, 0  ;;  %v47_v28 = vpack.c.bf16 %v33_v27, %v32_v26  ;;  %v31_v31 = vld [vmem:[%s562_s0 + $0x8] sm:$0xff]  ;;  %v68_v32 = vld [vmem:[%s564_s2 + $0x30] sm:$0xff]  ;;  %v66_v33 = vld [vmem:[%s564_s2 + $0x20] sm:$0xff] }
   0xc   :  { %v153_v20 = vsel %vm130_vm0, %v49_v19, 0  ;;  %v150_v25 = vsel %vm130_vm0, %v48_v23, 0  ;;  %v46_v34 = vpack.c.bf16 %v31_v31, %v30_v30  ;;  %102 = vperm.xlu0 %368, %v68_v32   ;;  %92 = vperm.xlu1 %369, %v66_v33   ;;  %v69_v36 = vld [vmem:[%s564_s2 + $0x38] sm:$0xff]  ;;  %v353_v37 = vld [vmem:[%s563_s1 + $0x8] sm:$0xff]  ;;  %v352_v38 = vld [vmem:[%s563_s1] sm:$0xff] }
   0xd   :  { %v147_v29 = vsel %vm130_vm0, %v47_v28, 0  ;;  %v62_v39 = vld [vmem:[%s564_s2] sm:$0xff]  ;;  %v67_v40 = vld [vmem:[%s564_s2 + $0x28] sm:$0xff]  ;;  %v64_v41 = vld [vmem:[%s564_s2 + $0x10] sm:$0xff] }
   0xe   :  { %v144_v35 = vsel %vm130_vm0, %v46_v34, 0  ;;  %82 = vperm.xlu2 %370, %v64_v41   ;;  %v63_v42 = vld [vmem:[%s564_s2 + $0x8] sm:$0xff]  ;;  %v65_v43 = vld [vmem:[%s564_s2 + $0x18] sm:$0xff]  ;;  %v354_v45 = vld [vmem:[%s563_s1 + $0x10] sm:$0xff] }
   0xf   :  { %359 = vmatpush.bf16.xpose.msra.mxu3 %v162_v8  ;;  %168 = vmatpush.bf16.xpose.msra.mxu0 %v162_v8  ;;  %v215_v44 = vld [vmem:[%s566_s4 + $0x18] sm:$0xff]  ;;  %v212_v46 = vld [vmem:[%s566_s4] sm:$0xff]  ;;  %v214_v47 = vld [vmem:[%s566_s4 + $0x10] sm:$0xff] }
  0x10   :  { %v279_v48 = vld [vmem:[#allocation2] sm:$0x1]  ;;  %v213_v49 = vld [vmem:[%s566_s4 + $0x8] sm:$0xff]  ;;  %v355_v50 = vld [vmem:[%s563_s1 + $0x18] sm:$0xff] }
  0x11   :  { %v356_v23 = vld [vmem:[%s565_s3] sm:$0xff]  ;;  %v357_v24 = vld [vmem:[%s565_s3 + $0x8] sm:$0xff] }
  0x14   :  { %107 = vperm.xlu0 %368, %v69_v36   ;;  %97 = vperm.xlu1 %369, %v67_v40  }
  0x16   :  { %87 = vperm.xlu2 %370, %v65_v43   ;;  %v276_v43 = vld [vmem:[%s567_s5] sm:$0x1] }
  0x17   :  { %360 = vmatpush.bf16.xpose.msra.mxu3 %v159_v12  ;;  %169 = vmatpush.bf16.xpose.msra.mxu0 %v159_v12 }
  0x1c   :  { %72 = vperm.xlu0 %368, %v62_v39   ;;  %77 = vperm.xlu1 %369, %v63_v42  }
  0x1e   :  { %228 = vperm.xlu2 %370, %v214_v47  }
  0x1f   :  { %361 = vmatpush.bf16.xpose.msra.mxu3 %v156_v16  ;;  %170 = vmatpush.bf16.xpose.msra.mxu0 %v156_v16 }
  0x24   :  { %233 = vperm.xlu0 %368, %v215_v44   ;;  %218 = vperm.xlu1 %369, %v212_v46  }
  0x26   :  { %223 = vperm.xlu2 %370, %v213_v49  }
  0x27   :  { %362 = vmatpush.bf16.xpose.msra.mxu3 %v153_v20  ;;  %171 = vmatpush.bf16.xpose.msra.mxu0 %v153_v20 }
  0x2c   :  { %282 = vperm.xlu0 %368, %v279_v48  }
  0x2f   :  { %363 = vmatpush.bf16.xpose.msra.mxu3 %v150_v25  ;;  %172 = vmatpush.bf16.xpose.msra.mxu0 %v150_v25 }
  0x37   :  { %364 = vmatpush.bf16.xpose.msra.mxu3 %v147_v29  ;;  %173 = vmatpush.bf16.xpose.msra.mxu0 %v147_v29 }
  0x3f   :  { %365 = vmatpush.bf16.xpose.msra.mxu3 %v144_v35  ;;  %174 = vmatpush.bf16.xpose.msra.mxu0 %v144_v35 }
  0x46   :  { %338 = vmatmul.msk.bf16.vlgmr.msra.gmra.mxu3 %vm130_vm0, %v353_v37  ;;  %337 = vmatmul.msk.bf16.vlgmr.msra.gmra.mxu0 %vm130_vm0, %v352_v38 }
  0x56   :  { %339 = vmatmul.msk.bf16.gmra.mxu3 %vm130_vm0, %v354_v45 }
  0x66   :  { %340 = vmatmul.msk.bf16.gmra.mxu3 %vm130_vm0, %v355_v50 }
  0x68   :  { %v83_v57 = vpop.permute.xlu2 %82 }
  0x70   :  { %v88_v2 = vpop.permute.xlu2 %87 }
  0x78   :  { %v229_v27 = vpop.permute.xlu2 %228 }
  0x7e   :  { %v103_v55 = vpop.permute.xlu0 %102  ;;  %v93_v56 = vpop.permute.xlu1 %92 }
  0x80   :  { %v224_v31 = vpop.permute.xlu2 %223 }
  0x86   :  { %v108_v60 = vpop.permute.xlu0 %107  ;;  %v98_v61 = vpop.permute.xlu1 %97 }
  0x8e   :  { %v73_v12 = vpop.permute.xlu0 %72  ;;  %v78_v13 = vpop.permute.xlu1 %77 }
  0x96   :  { %v234_v29 = vpop.permute.xlu0 %233  ;;  %v219_v35 = vpop.permute.xlu1 %218 }
  0x9e   :  { %v283_v44 = vpop.permute.xlu0 %282 }
  0x9f   :  { %v285_v45 = vperm.slane %v283_v44, 0 }
  0xc3   :  { %v176_v59 = vpop.f32.mrf.mxu0 }
  0xc4   :  { %v177_v15 = vadd.f32 %v176_v59, %v73_v12 }
  0xc6   :  { %v196_v19 = vmax.f32 %v177_v15, 0.0 }
  0xc9   :  { %v181_v51 = vpop.f32.mrf.mxu3 }
  0xca   :  { %v182_v10 = vadd.f32 %v181_v51, %v83_v57 }
  0xcb   :  { %v178_v9 = vpop.f32.mrf.mxu0 }
  0xcc   :  { %v179_v16 = vadd.f32 %v178_v9, %v78_v13  ;;  %v198_v18 = vmax.f32 %v182_v10, 0.0 }
  0xce   :  { %v197_v20 = vmax.f32 %v179_v16, 0.0 }
  0xd0   :  { %v208_v22 = vpack.c.bf16 %v197_v20, %v196_v19 }
  0xd1   :  { %v183_v52 = vpop.f32.mrf.mxu3 }
  0xd2   :  { %v184_v6 = vadd.f32 %v183_v52, %v88_v2 }
  0xd4   :  { %v199_v14 = vmax.f32 %v184_v6, 0.0 }
  0xd6   :  { %v209_v21 = vpack.c.bf16 %v199_v14, %v198_v18 }
  0xd9   :  { %v186_v53 = vpop.f32.mrf.mxu3 }
  0xda   :  { %v187_v3 = vadd.f32 %v186_v53, %v93_v56 }
  0xdc   :  { %v200_v11 = vmax.f32 %v187_v3, 0.0 }
  0xe1   :  { %v188_v54 = vpop.f32.mrf.mxu3 }
  0xe2   :  { %v189_v0 = vadd.f32 %v188_v54, %v98_v61 }
  0xe4   :  { %v201_v7 = vmax.f32 %v189_v0, 0.0 }
  0xe6   :  { %v210_v17 = vpack.c.bf16 %v201_v7, %v200_v11 }
  0xe9   :  { %v191_v58 = vpop.f32.mrf.mxu3 }
  0xea   :  { %v192_v62 = vadd.f32 %v191_v58, %v103_v55 }
  0xec   :  { %v202_v4 = vmax.f32 %v192_v62, 0.0 }
  0xf1   :  { %v193_v63 = vpop.f32.mrf.mxu3 }
  0xf2   :  { %v194_v1 = vadd.f32 %v193_v63, %v108_v60 }
  0xf4   :  { %v203_v5 = vmax.f32 %v194_v1, 0.0 }
  0xf6   :  { %v211_v8 = vpack.c.bf16 %v203_v5, %v202_v4 }
  0xf8   :  { %257 = vmatpush.bf16.msra.mxu1 %v211_v8 }
  0xfc   :  { %258 = vmatpush.bf16.msra.mxu1 %v210_v17 }
 0x100   :  { %259 = vmatpush.bf16.msra.mxu1 %v209_v21 }
 0x104   :  { %260 = vmatpush.bf16.msra.mxu1 %v208_v22 }
 0x107   :  { %349 = vmatmul.msk.bf16.vlgmr.msra.gmra.mxu1 %vm246_vm1, %v356_v23 }
 0x117   :  { %350 = vmatmul.msk.bf16.gmra.mxu1 %vm246_vm1, %v357_v24 }
 0x184   :  { %v262_v25 = vpop.f32.mrf.mxu1 }
 0x185   :  { %v263_v36 = vadd.f32 %v262_v25, %v219_v35 }
 0x187   :  { %v272_v41 = vmax.f32 %v263_v36, 0.0 }
 0x18c   :  { %v264_v26 = vpop.f32.mrf.mxu1 }
 0x18d   :  { %v265_v33 = vadd.f32 %v264_v26, %v224_v31 }
 0x18f   :  { %v273_v39 = vmax.f32 %v265_v33, 0.0 }
 0x191   :  { %v277_v42 = vpack.c.bf16 %v273_v39, %v272_v41 }
 0x194   :  { %v267_v28 = vpop.f32.mrf.mxu1 }
 0x195   :  { %v268_v30 = vadd.f32 %v267_v28, %v229_v27 }
 0x197   :  { %v274_v37 = vmax.f32 %v268_v30, 0.0 }
 0x19c   :  { %v269_v32 = vpop.f32.mrf.mxu1 }
 0x19d   :  { %v270_v34 = vadd.f32 %v269_v32, %v234_v29 }
 0x19f   :  { %v275_v38 = vmax.f32 %v270_v34, 0.0 }
 0x1a1   :  { %v278_v40 = vpack.c.bf16 %v275_v38, %v274_v37 }
 0x1a3   :  { %296 = vmatpush.bf16.msra.mxu2 %v278_v40 }
 0x1a7   :  { %297 = vmatpush.bf16.msra.mxu2 %v277_v42 }
 0x1aa   :  { %351 = vmatmul.msk.bf16.vlgmr.msra.gmra.mxu2 %vm286_vm2, %v276_v43 }
 0x22d   :  { %v299_v46 = vpop.f32.mrf.mxu2 }
 0x22e   :  { %v300_v47 = vadd.f32 %v299_v46, %v285_v45 }
 0x230   :  { %v303_v48 = vmax.f32 %v300_v47, 0.0 }
 0x232   :  { %304 = vst [vmem:[#allocation3] sm:$0x1] %v303_v48 }
 0x233   :  { %315 = dma.vmem_to_hbm [thread:$0]  %s311_s19, 16, %s313_s22, [#allocation4]  }
 0x235   :  { %v301_v49 = vpop.f32.mrf.mxu2 }
 0x236   :  { %395 = dma.done.wait [#allocation4], 16  }
 0x237   :  { %396 = vsyncadd [#allocation4], 4294967280 }
 0x238   :  { %320 = vsyncpa [#allocation4], 1 }

</bundles_post_ra>
